<compile_context>
chip_gen: v7x
topology: tpu7x:2x2x1
jax: 0.10.0
libtpu: 0.0.40
codegen_flags: <defaults>
</compile_context>

<pallas_src>
import math
from functools import partial

import jax
import jax.numpy as jnp
from jax.experimental import pallas as pl
from jax.experimental.pallas import tpu as pltpu


def _round_up(x, m):
    return ((x + m - 1) // m) * m


def _choose_tm(n, dim, itemsize, tm_max=2048, x_bytes_budget=8 << 20):
    """Row-tile size: as large as the VMEM budget allows (mem-bound regime),
    a multiple of 8, and (when n is big enough) at least two grid steps so the
    "parallel" grid axis gives both v7x TensorCores work."""
    n8 = _round_up(max(int(n), 1), 8)
    if n8 <= 8:
        return 8
    # Keep the double-buffered x tile within the budget (safe on v5e/v6e/v7x defaults).
    vmem_cap = max(8, ((x_bytes_budget // (2 * dim * itemsize)) // 8) * 8)
    two_step = _round_up((n8 + 1) // 2, 8)          # aim for >= 2 grid iterations
    return max(8, min(tm_max, vmem_cap, two_step))


def _linear_module_kernel(x_ref, w1_ref, b1_ref, w2_ref, o_ref):
    # x_ref : [TM, dim]       streaming row tile of the input
    # w1_ref: [dim, hidden]   fc1 weight, pre-transposed (grid-resident)
    # b1_ref: [1, hidden]     fc1 bias (grid-resident)
    # w2_ref: [hidden, 128]   fc2 weight, pre-transposed, zero-padded to 128 lanes
    # o_ref : [TM, out_dim]   narrow output tile (out_dim = 2) -> tiny HBM writeback
    x = x_ref[...]
    h = jnp.dot(x, w1_ref[...], preferred_element_type=jnp.float32) + b1_ref[...]
    h = jnp.maximum(h, 0.0)
    out = jnp.dot(h.astype(w2_ref.dtype), w2_ref[...],
                  preferred_element_type=jnp.float32)
    o_ref[...] = out[:, : o_ref.shape[1]].astype(o_ref.dtype)


def prepare_linear_module_params(fc1_weight, fc1_bias, fc2_weight,
                                 compute_dtype=jnp.float32, out_pad=128):
    """One-time parameter prep (hoisted out of the per-call path):
    transpose weights to [in, out], reshape the bias, zero-pad fc2 to 128 lanes."""
    hidden = fc1_weight.shape[0]
    out_dim = fc2_weight.shape[0]
    w1_t = jnp.asarray(fc1_weight, dtype=compute_dtype).T          # [dim, hidden]
    b1 = jnp.asarray(fc1_bias, dtype=jnp.float32).reshape(1, hidden)
    w2_t = jnp.pad(jnp.asarray(fc2_weight, dtype=compute_dtype).T,  # [hidden, out_pad]
                   ((0, 0), (0, out_pad - out_dim)))
    return w1_t, b1, w2_t, out_dim


@partial(jax.jit, static_argnames=("out_dim", "tm_max"))
def linear_module_forward(x, w1_t, b1, w2_t, *, out_dim, tm_max=2048):
    """x: [N, dim] -> [N, out_dim] (out_dim = 2)."""
    n, dim = x.shape
    hidden = w1_t.shape[1]
    out_pad = w2_t.shape[1]

    x = x.astype(w1_t.dtype)
    itemsize = jnp.dtype(w1_t.dtype).itemsize

    tm = _choose_tm(n, dim, itemsize, tm_max=tm_max)
    n_pad = _round_up(n, tm)
    if n_pad != n:
        x = jnp.pad(x, ((0, n_pad - n), (0, 0)))
    grid = (n_pad // tm,)

    out = pl.pallas_call(
        _linear_module_kernel,
        out_shape=jax.ShapeDtypeStruct((n_pad, out_dim), jnp.float32),
        grid_spec=pltpu.PrefetchScalarGridSpec(
            num_scalar_prefetch=0,
            grid=grid,
            in_specs=[
                pl.BlockSpec((tm, dim), lambda i: (i, 0)),          # streaming x rows
                pl.BlockSpec((dim, hidden), lambda i: (0, 0)),      # fc1 weight (resident)
                pl.BlockSpec((1, hidden), lambda i: (0, 0)),        # fc1 bias (resident)
                pl.BlockSpec((hidden, out_pad), lambda i: (0, 0)),  # padded fc2 weight
            ],
            out_specs=pl.BlockSpec((tm, out_dim), lambda i: (i, 0)),  # narrow writeback
        ),
        compiler_params=pltpu.CompilerParams(
            dimension_semantics=("parallel",)),
    )(x, w1_t, b1, w2_t)

    return out[:n]


def xavier_normal(key, shape, gain):
    # PyTorch xavier_normal_ for a 2-D [fan_out, fan_in] weight.
    fan_out, fan_in = shape
    std = gain * math.sqrt(2.0 / float(fan_in + fan_out))
    return std * jax.random.normal(key, shape, dtype=jnp.float32)


if __name__ == "__main__":
    N, DIM = 256, 64          # rows, feature dim (hidden = DIM // 2 = 32)
    HID = DIM // 2

    key = jax.random.PRNGKey(0)
    kx, kw1, kb1, kw2 = jax.random.split(key, 4)

    x = jax.random.normal(kx, (N, DIM), dtype=jnp.float32)
    fc1_w = xavier_normal(kw1, (HID, DIM), gain=1.414)           # [hidden, dim]
    bound = 1.0 / math.sqrt(DIM)                                  # PyTorch default bias init
    fc1_b = jax.random.uniform(kb1, (HID,), jnp.float32, -bound, bound)
    fc2_w = xavier_normal(kw2, (2, HID), gain=1.414)              # [2, hidden]

    # One-time, hoisted parameter preparation.
    w1_t, b1, w2_t, out_dim = prepare_linear_module_params(fc1_w, fc1_b, fc2_w)

    out = linear_module_forward(x, w1_t, b1, w2_t, out_dim=out_dim)
    out = jax.block_until_ready(out)

    # Pure-JAX reference of the same semantics.
    h_ref = jax.nn.relu(x @ fc1_w.T + fc1_b)
    ref = h_ref @ fc2_w.T
    assert out.shape == (N, 2)
    assert jnp.allclose(out, ref, atol=1e-4, rtol=1e-4)

    print("KERNEL_OK")
</pallas_src>

<mosaic_0001>
module attributes {stable_mosaic.version = 11 : i64} {
  func.func @_linear_module_kernel(%arg0: i32, %arg1: memref<128x64xf32, #tpu.memory_space<vmem>>, %arg2: memref<64x32xf32, #tpu.memory_space<vmem>>, %arg3: memref<1x32xf32, #tpu.memory_space<vmem>>, %arg4: memref<32x128xf32, #tpu.memory_space<vmem>>, %arg5: memref<128x2xf32, #tpu.memory_space<vmem>>) attributes {dimension_semantics = [#tpu.dimension_semantics<parallel>], iteration_bounds = array<i64: 2>, scalar_prefetch = 0 : i64, scratch_operands = 0 : i64, tpu.core_type = #tpu.core_type<tc>, window_params = [{transform_indices = @transform_0, window_bounds = array<i64: 128, 64>}, {pipeline_mode = #tpu.pipeline_mode<synchronous>, transform_indices = @transform_1, window_bounds = array<i64: 64, 32>}, {pipeline_mode = #tpu.pipeline_mode<synchronous>, transform_indices = @transform_2, window_bounds = array<i64: 1, 32>}, {pipeline_mode = #tpu.pipeline_mode<synchronous>, transform_indices = @transform_3, window_bounds = array<i64: 32, 128>}, {transform_indices = @transform_4, window_bounds = array<i64: 128, 2>}]} {
    %c0 = arith.constant 0 : index
    %c0_0 = arith.constant 0 : index
    %0 = vector.load %arg1[%c0, %c0_0] : memref<128x64xf32, #tpu.memory_space<vmem>>, vector<128x64xf32>
    %c0_1 = arith.constant 0 : index
    %c0_2 = arith.constant 0 : index
    %1 = vector.load %arg2[%c0_1, %c0_2] : memref<64x32xf32, #tpu.memory_space<vmem>>, vector<64x32xf32>
    %cst = arith.constant dense<0.000000e+00> : vector<128x32xf32>
    %2 = tpu.matmul %0, %1, %cst {dimension_numbers = #tpu.dot_dimension_numbers<[1], [0], [0], [1], [0, 0, 1, 1], [], []>} : vector<128x64xf32>, vector<64x32xf32>, vector<128x32xf32> -> vector<128x32xf32>
    %c0_3 = arith.constant 0 : index
    %c0_4 = arith.constant 0 : index
    %3 = vector.load %arg3[%c0_3, %c0_4] : memref<1x32xf32, #tpu.memory_space<vmem>>, vector<1x32xf32>
    %4 = vector.broadcast %3 : vector<1x32xf32> to vector<128x32xf32>
    %5 = arith.addf %2, %4 : vector<128x32xf32>
    %cst_5 = arith.constant 0.000000e+00 : f32
    %6 = vector.broadcast %cst_5 : f32 to vector<128x32xf32>
    %7 = arith.maximumf %5, %6 : vector<128x32xf32>
    %c0_6 = arith.constant 0 : index
    %c0_7 = arith.constant 0 : index
    %8 = vector.load %arg4[%c0_6, %c0_7] : memref<32x128xf32, #tpu.memory_space<vmem>>, vector<32x128xf32>
    %cst_8 = arith.constant dense<0.000000e+00> : vector<128x128xf32>
    %9 = tpu.matmul %7, %8, %cst_8 {dimension_numbers = #tpu.dot_dimension_numbers<[1], [0], [0], [1], [0, 0, 1, 1], [], []>} : vector<128x32xf32>, vector<32x128xf32>, vector<128x128xf32> -> vector<128x128xf32>
    %10 = vector.extract_strided_slice %9 {offsets = [0, 0], sizes = [128, 2], strides = [1, 1]} : vector<128x128xf32> to vector<128x2xf32>
    %c0_9 = arith.constant 0 : index
    %c0_10 = arith.constant 0 : index
    %11 = vector.load %arg5[%c0_9, %c0_10] : memref<128x2xf32, #tpu.memory_space<vmem>>, vector<128x2xf32>
    tpu.vector_store %arg5[%c0_9, %c0_10], %10 {strides = array<i32>} : memref<128x2xf32, #tpu.memory_space<vmem>>, vector<128x2xf32>,
    return
  }
  func.func @transform_0(%arg0: i32) -> (i32, i32) {
    %c0_i32 = arith.constant 0 : i32
    %c0_i32_0 = arith.constant 0 : i32
    return %arg0, %c0_i32 : i32, i32
  }
  func.func @transform_1(%arg0: i32) -> (i32, i32) {
    %c0_i32 = arith.constant 0 : i32
    %c0_i32_0 = arith.constant 0 : i32
    %c0_i32_1 = arith.constant 0 : i32
    return %c0_i32, %c0_i32_0 : i32, i32
  }
  func.func @transform_2(%arg0: i32) -> (i32, i32) {
    %c0_i32 = arith.constant 0 : i32
    %c0_i32_0 = arith.constant 0 : i32
    %c0_i32_1 = arith.constant 0 : i32
    return %c0_i32, %c0_i32_0 : i32, i32
  }
  func.func @transform_3(%arg0: i32) -> (i32, i32) {
    %c0_i32 = arith.constant 0 : i32
    %c0_i32_0 = arith.constant 0 : i32
    %c0_i32_1 = arith.constant 0 : i32
    return %c0_i32, %c0_i32_0 : i32, i32
  }
  func.func @transform_4(%arg0: i32) -> (i32, i32) {
    %c0_i32 = arith.constant 0 : i32
    %c0_i32_0 = arith.constant 0 : i32
    return %arg0, %c0_i32 : i32, i32
  }
}

</mosaic_0001>

<bundles_post_ra>
// kernel: linear_module_forward.1
= control target key start
LH: loop header
LB: loop body
LE: loop exit
PB: predicated region body
PF: predicated region fallthrough
CT: control target
= control target key end

     0   :  { %s938_s15 = smov 0   ;;  %s1085_s0 = inlined_call_operand.vmem [shape: f32[256,64], index: 0, kind: input, shape index: {}]   ;;  %s1086_s1 = inlined_call_operand.vmem [shape: f32[64,32], index: 1, kind: input, shape index: {}]   ;;  %s1087_s2 = inlined_call_operand.vmem [shape: f32[1,32], index: 2, kind: input, shape index: {}]   ;;  %s1088_s3 = inlined_call_operand.vmem [shape: f32[32,128], index: 3, kind: input, shape index: {}]   ;;  %s1089_s4 = inlined_call_operand.vmem [shape: f32[256,2], index: 4, kind: output, shape index: {}]  }
   0x1 LB: > { %s713_s16 = sadd.s32 4294967295, %s911_s15   ;;  %p717_p0 = scmp.ge.s32.totalorder %s911_s15, 1  ;;  %s911_s15 = sphi %s938_s15, %s14_s15  }
   0x2   : > { %p163_p1 = scmp.lt.s32.totalorder %s911_s15, 3 }
   0x4   : > { %p164_p2 = pnand %p717_p0, %p163_p1 }
   0x5   : > { %v217_v0 = vld [vmem:[%s1086_s1] sm:$0xff] (!%p164_p2)  ;;  %v218_v1 = vld [vmem:[%s1086_s1 + $0x8] sm:$0xff] (!%p164_p2)  ;;  %v219_v2 = vld [vmem:[%s1086_s1 + $0x10] sm:$0xff] (!%p164_p2)  ;;  %s718_s23 = sshll.u32 (!%p164_p2), %s713_s16, 4  ;;  %vm232_vm0 = vcmask (!%p164_p2), 523264   ;;  %vm446_vm1 = vcmask (!%p164_p2), 261120  }
   0x6   : > { %167 = sbr.rel (%p164_p2) target bundleno = 484 (0x1e4), region = 36  ;;  %v873_v3 = vpack.c.bf16 (!%p164_p2), %v218_v1, %v217_v0  ;;  %v220_v4 = vld [vmem:[%s1086_s1 + $0x18] sm:$0xff] (!%p164_p2)  ;;  %p190_p3 = scmp.lt.s32.totalorder (!%p164_p2), %s718_s23, 31  ;;  %v221_v6 = vld [vmem:[%s1086_s1 + $0x20] sm:$0xff] (!%p164_p2)  ;;  %v222_v7 = vld [vmem:[%s1086_s1 + $0x28] sm:$0xff] (!%p164_p2)  ;;  %vm640_vm2 = vcmask (!%p164_p2), 15360  }
   0x7   : > { %v877_v5 = vpack.c.bf16 (!%p164_p2), %v220_v4, %v219_v2  ;;  %v442_v8 = vld [vmem:[%s1088_s3] sm:$0xff] (!%p164_p2)  ;;  %v443_v9 = vld [vmem:[%s1088_s3 + $0x8] sm:$0xff] (!%p164_p2)  ;;  %v881_v11 = vpack.c.bf16 (!%p164_p2), %v222_v7, %v221_v6  ;;  %v223_v12 = vld [vmem:[%s1086_s1 + $0x30] sm:$0xff] (!%p164_p2) }
   0x8   : > { %874 = vmatprep.subr.bf16.mxu0 (!%p164_p2), %v873_v3  ;;  %v889_v10 = vpack.c.bf16 (!%p164_p2), %v443_v9, %v442_v8  ;;  %v224_v13 = vld [vmem:[%s1086_s1 + $0x38] sm:$0xff] (!%p164_p2)  ;;  %v444_v31 = vld [vmem:[%s1088_s3 + $0x10] sm:$0xff] (!%p164_p2)  ;;  %v722_v34 = vld [vmem:[%s1087_s2] ss:$0 sm:$0xff] (!%p164_p2) }
   0x9   : > { %876 = vmatpush3.bf16.msra.mxu0 (!%p164_p2), %v873_v3  ;;  %v885_v15 = vpack.c.bf16 (!%p164_p2), %v224_v13, %v223_v12  ;;  %v445_v32 = vld [vmem:[%s1088_s3 + $0x18] sm:$0xff] (!%p164_p2) }
   0xa   : > { %878 = vmatprep.subr.bf16.mxu0 (!%p164_p2), %v877_v5  ;;  %890 = vmatprep.subr.bf16.mxu1 (!%p164_p2), %v889_v10  ;;  %v893_v33 = vpack.c.bf16 (!%p164_p2), %v445_v32, %v444_v31 }
   0xb   : > { %892 = vmatpush3.bf16.msra.mxu1 (!%p164_p2), %v889_v10 }
   0xc   : > { %894 = vmatprep.subr.bf16.mxu1 (!%p164_p2), %v893_v33 }
   0xd   : > { %s1091_s23 = smov (!%p190_p3, %s718_s23), 31  ;;  %880 = vmatpush3.bf16.msra.mxu0 %v877_v5 }
   0xe   : > { %s719_s8 = sshll.u32 %s1091_s23, 3  ;;  %882 = vmatprep.subr.bf16.mxu0 %v881_v11 }
   0xf   : > { %s984_s16 = scalar_lea.vmem %s1085_s0, %s719_s8  ;;  %896 = vmatpush3.bf16.msra.mxu1 %v893_v33  ;;  %s1048_s26 = scalar_lea.vmem %s1089_s4, %s719_s8 }
  0x10   : > { %v201_v14 = vld [vmem:[%s984_s16] sm:$0xff]  ;;  %v202_v16 = vld [vmem:[%s984_s16 + $0x8] sm:$0xff]  ;;  %v203_v17 = vld [vmem:[%s984_s16 + $0x10] sm:$0xff] }
  0x11   : > { %817 = vmatprep.mubr.msk.f32.mxu0 %vm232_vm0, %v201_v14  ;;  %884 = vmatpush3.bf16.msra.mxu0 %v881_v11  ;;  %v204_v18 = vld [vmem:[%s984_s16 + $0x18] sm:$0xff]  ;;  %v205_v19 = vld [vmem:[%s984_s16 + $0x20] sm:$0xff]  ;;  %v206_v20 = vld [vmem:[%s984_s16 + $0x28] sm:$0xff] }
  0x12   : > { %886 = vmatprep.subr.bf16.mxu0 %v885_v15  ;;  %v207_v21 = vld [vmem:[%s984_s16 + $0x30] sm:$0xff]  ;;  %v208_v22 = vld [vmem:[%s984_s16 + $0x38] sm:$0xff]  ;;  %v209_v23 = vld [vmem:[%s984_s16 + $0x40] sm:$0xff] }
  0x13   : > { %v210_v24 = vld [vmem:[%s984_s16 + $0x48] sm:$0xff]  ;;  %v211_v25 = vld [vmem:[%s984_s16 + $0x50] sm:$0xff]  ;;  %v212_v26 = vld [vmem:[%s984_s16 + $0x58] sm:$0xff] }
  0x14   : > { %v213_v27 = vld [vmem:[%s984_s16 + $0x60] sm:$0xff]  ;;  %v214_v28 = vld [vmem:[%s984_s16 + $0x68] sm:$0xff]  ;;  %v215_v29 = vld [vmem:[%s984_s16 + $0x70] sm:$0xff] }
  0x15   : > { %888 = vmatpush3.bf16.msra.mxu0 %v885_v15  ;;  %v216_v30 = vld [vmem:[%s984_s16 + $0x78] sm:$0xff] }
  0x18   : > { %818 = vmatmul.mubr.msk.f32.vlgmr.msra.gmra.mrb[0].mxu0 %vm232_vm0, %v202_v16 }
  0x19   : > { %820 = vmatprep.mubr.msk.f32.mxu0 %vm232_vm0, %v203_v17 }
  0x1c   : > { %821 = vmatmul.mubr.msk.f32.gmra.mrb[2].mxu0 %vm232_vm0, %v204_v18 }
  0x1d   : > { %823 = vmatprep.mubr.msk.f32.mxu0 %vm232_vm0, %v205_v19 }
  0x20   : > { %824 = vmatmul.mubr.msk.f32.gmra.mrb[4].mxu0 %vm232_vm0, %v206_v20 }
  0x21   : > { %826 = vmatprep.mubr.msk.f32.mxu0 %vm232_vm0, %v207_v21 }
  0x24   : > { %827 = vmatmul.mubr.msk.f32.gmra.mrb[6].mxu0 %vm232_vm0, %v208_v22 }
  0x25   : > { %829 = vmatprep.mubr.msk.f32.mxu0 %vm232_vm0, %v209_v23 }
  0x28   : > { %830 = vmatmul.mubr.msk.f32.gmra.mrb[8].mxu0 %vm232_vm0, %v210_v24 }
  0x29   : > { %832 = vmatprep.mubr.msk.f32.mxu0 %vm232_vm0, %v211_v25 }
  0x2c   : > { %833 = vmatmul.mubr.msk.f32.gmra.mrb[10].mxu0 %vm232_vm0, %v212_v26 }
  0x2d   : > { %835 = vmatprep.mubr.msk.f32.mxu0 %vm232_vm0, %v213_v27 }
  0x30   : > { %836 = vmatmul.mubr.msk.f32.gmra.mrb[12].mxu0 %vm232_vm0, %v214_v28 }
  0x31   : > { %838 = vmatprep.mubr.msk.f32.mxu0 %vm232_vm0, %v215_v29 }
  0x34   : > { %839 = vmatmul.mubr.msk.f32.gmra.mrb[14].mxu0 %vm232_vm0, %v216_v30 }
  0xeb   : > { %v819_v35 = vpop.f32.mrb[0].mxu0 }
  0xec   : > { %v353_v36 = vadd.f32 %v819_v35, %v722_v34  ;;  %v347_v37 = vpop.f32.mrb[1].mxu0 }
  0xed   : > { %v348_v38 = vadd.f32 %v722_v34, %v347_v37 }
  0xee   : > { %v427_v41 = vmax.f32 %v353_v36, 0.0 }
  0xef   : > { %v426_v39 = vmax.f32 %v348_v38, 0.0  ;;  %v822_v40 = vpop.f32.mrb[2].mxu0 }
  0xf0   : > { %v363_v42 = vadd.f32 %v822_v40, %v722_v34  ;;  %v357_v43 = vpop.f32.mrb[3].mxu0 }
  0xf1   : > { %v358_v44 = vadd.f32 %v722_v34, %v357_v43  ;;  %849 = vmatprep.mubr.msk.f32.mxu1 %vm446_vm1, %v426_v39 }
  0xf2   : > { %850 = vmatmul.mubr.msk.f32.vlgmr.msra.gmra.mrb[0].mxu1 %vm446_vm1, %v427_v41  ;;  %v429_v47 = vmax.f32 %v363_v42, 0.0 }
  0xf3   : > { %v428_v45 = vmax.f32 %v358_v44, 0.0  ;;  %v825_v46 = vpop.f32.mrb[4].mxu0 }
  0xf4   : > { %v373_v48 = vadd.f32 %v825_v46, %v722_v34  ;;  %v367_v49 = vpop.f32.mrb[5].mxu0 }
  0xf5   : > { %v368_v50 = vadd.f32 %v722_v34, %v367_v49  ;;  %852 = vmatprep.mubr.msk.f32.mxu1 %vm446_vm1, %v428_v45 }
  0xf6   : > { %853 = vmatmul.mubr.msk.f32.gmra.mrb[2].mxu1 %vm446_vm1, %v429_v47  ;;  %v431_v53 = vmax.f32 %v373_v48, 0.0 }
  0xf7   : > { %v430_v51 = vmax.f32 %v368_v50, 0.0  ;;  %v828_v52 = vpop.f32.mrb[6].mxu0 }
  0xf8   : > { %v383_v54 = vadd.f32 %v828_v52, %v722_v34  ;;  %v377_v55 = vpop.f32.mrb[7].mxu0 }
  0xf9   : > { %v378_v56 = vadd.f32 %v722_v34, %v377_v55  ;;  %855 = vmatprep.mubr.msk.f32.mxu1 %vm446_vm1, %v430_v51 }
  0xfa   : > { %856 = vmatmul.mubr.msk.f32.gmra.mrb[4].mxu1 %vm446_vm1, %v431_v53  ;;  %v433_v59 = vmax.f32 %v383_v54, 0.0 }
  0xfb   : > { %v432_v57 = vmax.f32 %v378_v56, 0.0  ;;  %v831_v58 = vpop.f32.mrb[8].mxu0 }
  0xfc   : > { %v393_v60 = vadd.f32 %v831_v58, %v722_v34  ;;  %v387_v61 = vpop.f32.mrb[9].mxu0 }
  0xfd   : > { %v388_v62 = vadd.f32 %v722_v34, %v387_v61  ;;  %858 = vmatprep.mubr.msk.f32.mxu1 %vm446_vm1, %v432_v57 }
  0xfe   : > { %859 = vmatmul.mubr.msk.f32.gmra.mrb[6].mxu1 %vm446_vm1, %v433_v59  ;;  %v435_v1 = vmax.f32 %v393_v60, 0.0 }
  0xff   : > { %v434_v63 = vmax.f32 %v388_v62, 0.0  ;;  %v834_v0 = vpop.f32.mrb[10].mxu0 }
 0x100   : > { %v403_v2 = vadd.f32 %v834_v0, %v722_v34  ;;  %v397_v3 = vpop.f32.mrb[11].mxu0 }
 0x101   : > { %v398_v4 = vadd.f32 %v722_v34, %v397_v3  ;;  %861 = vmatprep.mubr.msk.f32.mxu1 %vm446_vm1, %v434_v63 }
 0x102   : > { %862 = vmatmul.mubr.msk.f32.gmra.mrb[8].mxu1 %vm446_vm1, %v435_v1  ;;  %v437_v7 = vmax.f32 %v403_v2, 0.0 }
 0x103   : > { %v436_v5 = vmax.f32 %v398_v4, 0.0  ;;  %v837_v6 = vpop.f32.mrb[12].mxu0 }
 0x104   : > { %v413_v8 = vadd.f32 %v837_v6, %v722_v34  ;;  %v407_v9 = vpop.f32.mrb[13].mxu0 }
 0x105   : > { %v408_v10 = vadd.f32 %v722_v34, %v407_v9  ;;  %864 = vmatprep.mubr.msk.f32.mxu1 %vm446_vm1, %v436_v5 }
 0x106   : > { %865 = vmatmul.mubr.msk.f32.gmra.mrb[10].mxu1 %vm446_vm1, %v437_v7  ;;  %v439_v13 = vmax.f32 %v413_v8, 0.0 }
 0x107   : > { %v438_v11 = vmax.f32 %v408_v10, 0.0  ;;  %v840_v12 = vpop.f32.mrb[14].mxu0 }
 0x108   : > { %v423_v14 = vadd.f32 %v840_v12, %v722_v34  ;;  %v417_v15 = vpop.f32.mrb[15].mxu0 }
 0x109   : > { %v418_v16 = vadd.f32 %v722_v34, %v417_v15  ;;  %867 = vmatprep.mubr.msk.f32.mxu1 %vm446_vm1, %v438_v11 }
 0x10a   : > { %868 = vmatmul.mubr.msk.f32.gmra.mrb[12].mxu1 %vm446_vm1, %v439_v13  ;;  %v441_v18 = vmax.f32 %v423_v14, 0.0 }
 0x10b   : > { %v440_v17 = vmax.f32 %v418_v16, 0.0 }
 0x10d   : > { %870 = vmatprep.mubr.msk.f32.mxu1 %vm446_vm1, %v440_v17 }
 0x10e   : > { %871 = vmatmul.mubr.msk.f32.gmra.mrb[14].mxu1 %vm446_vm1, %v441_v18 }
 0x1c5   : > { %v851_v19 = vpop.f32.mrb[0].mxu1 }
 0x1c6   : > { %642 = vst.msk [vmem:[%s1048_s26 + $0x8] sm:$0xff] %vm640_vm2, %v851_v19  ;;  %v561_v20 = vpop.f32.mrb[1].mxu1 }
 0x1c7   : > { %641 = vst.msk [vmem:[%s1048_s26] sm:$0xff] %vm640_vm2, %v561_v20 }
 0x1c9   : > { %v854_v21 = vpop.f32.mrb[2].mxu1 }
 0x1ca   : > { %644 = vst.msk [vmem:[%s1048_s26 + $0x18] sm:$0xff] %vm640_vm2, %v854_v21  ;;  %v571_v22 = vpop.f32.mrb[3].mxu1 }
 0x1cb   : > { %643 = vst.msk [vmem:[%s1048_s26 + $0x10] sm:$0xff] %vm640_vm2, %v571_v22 }
 0x1cd   : > { %v857_v23 = vpop.f32.mrb[4].mxu1 }
 0x1ce   : > { %646 = vst.msk [vmem:[%s1048_s26 + $0x28] sm:$0xff] %vm640_vm2, %v857_v23  ;;  %v581_v24 = vpop.f32.mrb[5].mxu1 }
 0x1cf   : > { %645 = vst.msk [vmem:[%s1048_s26 + $0x20] sm:$0xff] %vm640_vm2, %v581_v24 }
 0x1d1   : > { %v860_v25 = vpop.f32.mrb[6].mxu1 }
 0x1d2   : > { %648 = vst.msk [vmem:[%s1048_s26 + $0x38] sm:$0xff] %vm640_vm2, %v860_v25  ;;  %v591_v26 = vpop.f32.mrb[7].mxu1 }
 0x1d3   : > { %647 = vst.msk [vmem:[%s1048_s26 + $0x30] sm:$0xff] %vm640_vm2, %v591_v26 }
 0x1d5   : > { %v863_v27 = vpop.f32.mrb[8].mxu1 }
 0x1d6   : > { %650 = vst.msk [vmem:[%s1048_s26 + $0x48] sm:$0xff] %vm640_vm2, %v863_v27  ;;  %v601_v28 = vpop.f32.mrb[9].mxu1 }
 0x1d7   : > { %649 = vst.msk [vmem:[%s1048_s26 + $0x40] sm:$0xff] %vm640_vm2, %v601_v28 }
 0x1d9   : > { %v866_v29 = vpop.f32.mrb[10].mxu1 }
 0x1da   : > { %652 = vst.msk [vmem:[%s1048_s26 + $0x58] sm:$0xff] %vm640_vm2, %v866_v29  ;;  %v611_v30 = vpop.f32.mrb[11].mxu1 }
 0x1db   : > { %651 = vst.msk [vmem:[%s1048_s26 + $0x50] sm:$0xff] %vm640_vm2, %v611_v30 }
 0x1dd   : > { %v869_v31 = vpop.f32.mrb[12].mxu1 }
 0x1de   : > { %654 = vst.msk [vmem:[%s1048_s26 + $0x68] sm:$0xff] %vm640_vm2, %v869_v31  ;;  %v621_v32 = vpop.f32.mrb[13].mxu1 }
 0x1df   : > { %653 = vst.msk [vmem:[%s1048_s26 + $0x60] sm:$0xff] %vm640_vm2, %v621_v32 }
 0x1e1   : > { %v872_v33 = vpop.f32.mrb[14].mxu1 }
 0x1e2   : > { %656 = vst.msk [vmem:[%s1048_s26 + $0x78] sm:$0xff] %vm640_vm2, %v872_v33  ;;  %v631_v34 = vpop.f32.mrb[15].mxu1 }
 0x1e3   : > { %655 = vst.msk [vmem:[%s1048_s26 + $0x70] sm:$0xff] %vm640_vm2, %v631_v34 }
 0x1e4 PF: > { %s14_s15 = sadd.s32 1, %s911_s15  }
 0x1e5   : > { %p11_p4 = scmp.ge.s32.totalorder %s14_s15, 4  }
 0x1e7   :  { %13 = sbr.rel (!%p11_p4) target bundleno = 1 (0x1), region = 66 }

</bundles_post_ra>
